<compile_context>
chip_gen: v5e
topology: v5e:2x2
jax: 0.10.0
libtpu: 0.0.40
codegen_flags: <defaults>
</compile_context>

<pallas_src>
import functools

import jax
import jax.numpy as jnp
from jax import lax
from jax.experimental import pallas as pl
from jax.experimental.pallas import tpu as pltpu


def _cdiv(a, b):
    return -(-a // b)


def _round_up(x, m):
    return _cdiv(x, m) * m


def _round_down(x, m):
    return (x // m) * m


def _num_tensorcores():
    """Best-effort TensorCores per device: 2 on v7x/v4 (megacore), else 1."""
    try:
        info = pltpu.get_tpu_info()
        for attr in ("num_tensorcores", "tensorcores_per_chip",
                     "num_cores_per_chip", "core_count"):
            v = getattr(info, attr, None)
            if isinstance(v, int) and v in (1, 2):
                return v
    except Exception:
        pass
    try:
        kind = jax.devices()[0].device_kind.lower()
    except Exception:
        return 1
    if "v5" in kind or "v6" in kind:
        return 1
    if "v7" in kind or "v4" in kind:
        return 2
    return 1


def _plan_tiles(n, c, itemsize, num_parts, tile_vmem_bytes):
    """Pick (num_parts, tile_n, blocks_per_part, deep_pipeline)."""
    # Sublane padding of the lane-dense (C, tile_n) tile in VMEM.
    sublane = max(1, 32 // itemsize)                 # 8 for f32, 16 for bf16
    c_pad = _round_up(c, sublane)
    # VMEM per lane of tile_n: double-buffered y_prim tile + double-buffered
    # int32 label tile (pads to 8 sublanes) + the f32 accumulator row.
    bytes_per_lane = 2 * (c_pad * itemsize + 8 * 4) + 4
    cap = max(128, _round_down(tile_vmem_bytes // bytes_per_lane, 128))

    # Core sharding only pays off when each core gets at least one real tile.
    if num_parts > 1 and _round_up(n, 128) < num_parts * 128:
        num_parts = 1
    cols_per_part = _round_up(_cdiv(n, num_parts), 128)

    vmem_limited = cap < cols_per_part
    if vmem_limited:
        # Large C forces small tiles: keep headroom for a 3-deep input pipeline
        # (hides DMA issue latency on v7x's 3.2 TB/s HBM).
        cap = max(128, _round_down(cap * 2 // 3, 128))
    tile_n = min(cap, cols_per_part)
    blocks_per_part = _cdiv(cols_per_part, tile_n)
    deep_pipeline = vmem_limited and blocks_per_part >= 3
    return num_parts, tile_n, blocks_per_part, deep_pipeline


def _focal_loss_kernel(y_ref, yp_ref, out_ref, acc_ref, *, gamma, n_valid,
                       tile_n, blocks_per_part, first_masked_block,
                       total_blocks):
    # y_ref  : (1, T) int32     -- class indices, batch on lanes
    # yp_ref : (C, T) float     -- probabilities, classes on sublanes
    # out_ref: (1, 1, 1) f32    -- this part's (negated) partial loss
    # acc_ref: (1, T) f32       -- wide VMEM accumulator (per-lane partials)
    part = pl.program_id(0)
    step = pl.program_id(1)

    @pl.when(step == 0)
    def _init():
        acc_ref[...] = jnp.zeros_like(acc_ref)

    C, T = yp_ref.shape
    yp = yp_ref[...]                                     # native dtype (bf16 ok)

    # Gather p_i = y_prim[i, y_i]: one-hot over the (sublane) class axis and a
    # masked sublane reduce.  Compare/select stay in the input dtype; only the
    # reduced (1, T) row is promoted to f32.
    cls_idx = lax.broadcasted_iota(jnp.int32, (C, T), 0)
    onehot = cls_idx == y_ref[...]                       # (C, T)
    p = jnp.sum(jnp.where(onehot, yp, jnp.zeros_like(yp)),
                axis=0, keepdims=True).astype(jnp.float32)   # (1, T)

    eps = jnp.float32(1e-8)
    base = 1.0 - p + eps
    logp = jnp.log(p + eps)

    # gamma specialization: small integer gamma -> repeated VPU multiply.
    g = float(gamma)
    if g.is_integer() and 0 <= int(g) <= 8:
        gi = int(g)
        pow_term = jnp.ones_like(base) if gi == 0 else base
        for _ in range(max(gi - 1, 0)):
            pow_term = pow_term * base
    else:
        pow_term = jnp.exp(jnp.float32(g) * jnp.log(base))

    term = pow_term * logp                               # (1, T) f32

    if first_masked_block < total_blocks:                # static: tail exists
        gblock = part * blocks_per_part + step           # unclamped global block
        needs_mask = gblock >= first_masked_block

        @pl.when(jnp.logical_not(needs_mask))
        def _acc_full():
            acc_ref[...] += term                         # no mask on full blocks

        @pl.when(needs_mask)
        def _acc_masked():
            # Select (not multiply): blocks NaN/Inf from the garbage tail.
            col = gblock * tile_n + lax.broadcasted_iota(jnp.int32, (1, T), 1)
            acc_ref[...] += jnp.where(col < n_valid, term, 0.0)
    else:
        acc_ref[...] += term

    @pl.when(step == pl.num_programs(1) - 1)
    def _finalize():
        # Single cross-lane reduce of the wide accumulator.
        out_ref[0] = -jnp.sum(acc_ref[...], axis=-1, keepdims=True)


def focal_loss(y, y_prim, gamma, *, probs_layout="NC", num_parts=None,
               tile_vmem_bytes=20 * 1024 * 1024):
    """Pallas TPU implementation of FocalLoss.forward(y, y_prim).

    y       : (N,) integer class indices.
    y_prim  : probabilities; (N, C) if probs_layout == "NC" (module layout, one
              wrapper transpose), or (C, N) if probs_layout == "CN" (lane-dense
              producer layout, zero extra HBM copies).
    """
    if probs_layout not in ("NC", "CN"):
        raise ValueError("probs_layout must be 'NC' or 'CN'")
    n = int(y.shape[0])
    if probs_layout == "NC":
        c = int(y_prim.shape[1])
        # NOTE: this transpose is the one remaining extra HBM copy (~2x the
        # kernel's own traffic).  Producers that can emit class-major
        # probabilities should pass probs_layout="CN" to eliminate it.
        yp_t = jnp.transpose(y_prim)                     # (C, N)
    else:
        c = int(y_prim.shape[0])
        yp_t = y_prim                                    # already (C, N)

    y_row = y.astype(jnp.int32).reshape(1, n)            # (1, N)

    if num_parts is None:
        num_parts = _num_tensorcores()
    num_parts = max(1, int(num_parts))

    num_parts, tile_n, blocks_per_part, deep_pipeline = _plan_tiles(
        n, c, jnp.dtype(yp_t.dtype).itemsize, num_parts, tile_vmem_bytes)

    n_real_blocks = _cdiv(n, tile_n)
    total_blocks = num_parts * blocks_per_part
    first_masked_block = n // tile_n                     # first block w/ cols >= n
    last_real = n_real_blocks - 1

    def col_map(p, i):
        # Clamp so grid blocks past the real data re-read the last real block
        # (their contribution is masked to zero) -> no OOB windows, no padding.
        return (0, jnp.minimum(p * blocks_per_part + i, last_real))

    kernel = functools.partial(
        _focal_loss_kernel, gamma=gamma, n_valid=n, tile_n=tile_n,
        blocks_per_part=blocks_per_part,
        first_masked_block=first_masked_block, total_blocks=total_blocks)

    yp_spec_kwargs = {}
    if deep_pipeline and hasattr(pl, "Buffered"):
        yp_spec_kwargs["pipeline_mode"] = pl.Buffered(3)

    partials = pl.pallas_call(
        kernel,
        out_shape=jax.ShapeDtypeStruct((num_parts, 1, 1), jnp.float32),
        grid=(num_parts, blocks_per_part),
        in_specs=[
            pl.BlockSpec((1, tile_n), col_map),                      # labels
            pl.BlockSpec((c, tile_n), col_map, **yp_spec_kwargs),    # probs (C, N)
        ],
        out_specs=pl.BlockSpec((1, 1, 1), lambda p, i: (p, 0, 0)),
        scratch_shapes=[pltpu.VMEM((1, tile_n), jnp.float32)],
        compiler_params=pltpu.CompilerParams(
            dimension_semantics=("parallel", "arbitrary"),
            vmem_limit_bytes=48 * 1024 * 1024),
    )(y_row, yp_t)

    return jnp.sum(partials)


def _focal_loss_ref(y, y_prim, gamma):
    p = y_prim[jnp.arange(y.shape[0]), y].astype(jnp.float32)
    return -jnp.sum((1.0 - p + 1e-8) ** gamma * jnp.log(p + 1e-8))


if __name__ == "__main__":
    # Small shapes consistent with the module: Fashion-MNIST has C=10 classes;
    # N=200 exercises the ragged (non-multiple-of-128) tail without padding.
    N, C = 200, 10
    gamma = 2.0  # module __init__ takes gamma; chosen deterministically here

    key = jax.random.PRNGKey(0)
    k1, k2 = jax.random.split(key)
    logits = jax.random.normal(k1, (N, C), dtype=jnp.float32)
    y_prim = jax.nn.softmax(logits, axis=-1)                   # probabilities (N, C)
    y = jax.random.randint(k2, (N,), 0, C, dtype=jnp.int32)    # class indices (N,)

    ref = _focal_loss_ref(y, y_prim, gamma)

    # Default module layout (N, C).
    loss = focal_loss(y, y_prim, gamma)
    loss = jax.block_until_ready(loss)
    assert jnp.allclose(loss, ref, rtol=1e-4, atol=1e-5), (loss, ref)

    # Zero-copy class-major path (producer emits (C, N) directly).
    loss_cn = focal_loss(y, jnp.transpose(y_prim), gamma, probs_layout="CN")
    loss_cn = jax.block_until_ready(loss_cn)
    assert jnp.allclose(loss_cn, ref, rtol=1e-4, atol=1e-5), (loss_cn, ref)

    print("KERNEL_OK")
</pallas_src>

<mosaic_0001>
module attributes {stable_mosaic.version = 11 : i64} {
  func.func @_focal_loss_kernel(%arg0: i32, %arg1: i32, %arg2: memref<1x256xi32, #tpu.memory_space<vmem>>, %arg3: memref<10x256xf32, #tpu.memory_space<vmem>>, %arg4: memref<1x1x1xf32, #tpu.memory_space<vmem>>, %arg5: memref<1x256xf32, #tpu.memory_space<vmem>>) attributes {dimension_semantics = [#tpu.dimension_semantics<parallel>, #tpu.dimension_semantics<arbitrary>], iteration_bounds = array<i64: 1, 1>, scalar_prefetch = 0 : i64, scratch_operands = 1 : i64, tpu.core_type = #tpu.core_type<tc>, window_params = [{transform_indices = @transform_0, window_bounds = array<i64: 1, 256>}, {transform_indices = @transform_1, window_bounds = array<i64: 10, 256>}, {transform_indices = @transform_2, window_bounds = array<i64: 1, 1, 1>}]} {
    %c0_i32 = arith.constant 0 : i32
    %0 = arith.cmpi eq, %arg1, %c0_i32 : i32
    %1 = arith.extui %0 : i1 to i32
    %c0_i32_0 = arith.constant 0 : i32
    %2 = arith.cmpi ne, %1, %c0_i32_0 : i32
    scf.if %2 {
      %cst_13 = arith.constant 0.000000e+00 : f32
      %32 = vector.broadcast %cst_13 : f32 to vector<1x256xf32>
      %c0_14 = arith.constant 0 : index
      %c0_15 = arith.constant 0 : index
      %33 = vector.load %arg5[%c0_14, %c0_15] : memref<1x256xf32, #tpu.memory_space<vmem>>, vector<1x256xf32>
      tpu.vector_store %arg5[%c0_14, %c0_15], %32 {strides = array<i32>} : memref<1x256xf32, #tpu.memory_space<vmem>>, vector<1x256xf32>,
    } else {
    }
    %c0 = arith.constant 0 : index
    %c0_1 = arith.constant 0 : index
    %3 = vector.load %arg3[%c0, %c0_1] : memref<10x256xf32, #tpu.memory_space<vmem>>, vector<10x256xf32>
    %4 = tpu.iota {dimensions = array<i32: 0>} : vector<10x256xi32>
    %c0_2 = arith.constant 0 : index
    %c0_3 = arith.constant 0 : index
    %5 = vector.load %arg2[%c0_2, %c0_3] : memref<1x256xi32, #tpu.memory_space<vmem>>, vector<1x256xi32>
    %6 = vector.broadcast %5 : vector<1x256xi32> to vector<10x256xi32>
    %7 = arith.cmpi eq, %4, %6 : vector<10x256xi32>
    %cst = arith.constant 0.000000e+00 : f32
    %8 = vector.broadcast %cst : f32 to vector<10x256xf32>
    %9 = arith.select %7, %3, %8 : vector<10x256xi1>, vector<10x256xf32>
    %cst_4 = arith.constant dense<0.000000e+00> : vector<256xf32>
    %10 = vector.multi_reduction <add>, %9, %cst_4 [0] : vector<10x256xf32> to vector<256xf32>
    %11 = vector.shape_cast %10 : vector<256xf32> to vector<1x256xf32>
    %cst_5 = arith.constant 1.000000e+00 : f32
    %12 = vector.broadcast %cst_5 : f32 to vector<1x256xf32>
    %13 = arith.subf %12, %11 : vector<1x256xf32>
    %cst_6 = arith.constant 9.99999993E-9 : f32
    %14 = vector.broadcast %cst_6 : f32 to vector<1x256xf32>
    %15 = arith.addf %13, %14 : vector<1x256xf32>
    %cst_7 = arith.constant 9.99999993E-9 : f32
    %16 = vector.broadcast %cst_7 : f32 to vector<1x256xf32>
    %17 = arith.addf %11, %16 : vector<1x256xf32>
    %18 = math.log %17 : vector<1x256xf32>
    %19 = arith.mulf %15, %15 : vector<1x256xf32>
    %20 = arith.mulf %19, %18 : vector<1x256xf32>
    %c1_i32 = arith.constant 1 : i32
    %21 = arith.muli %arg0, %c1_i32 : i32
    %22 = arith.addi %21, %arg1 : i32
    %c0_i32_8 = arith.constant 0 : i32
    %23 = arith.cmpi sge, %22, %c0_i32_8 : i32
    %true = arith.constant true
    %24 = arith.xori %23, %true : i1
    %25 = arith.extui %24 : i1 to i32
    %c0_i32_9 = arith.constant 0 : i32
    %26 = arith.cmpi ne, %25, %c0_i32_9 : i32
    scf.if %26 {
      %c0_13 = arith.constant 0 : index
      %c0_14 = arith.constant 0 : index
      %32 = vector.load %arg5[%c0_13, %c0_14] : memref<1x256xf32, #tpu.memory_space<vmem>>, vector<1x256xf32>
      %33 = arith.addf %32, %20 : vector<1x256xf32>
      %c0_15 = arith.constant 0 : index
      %c0_16 = arith.constant 0 : index
      %34 = vector.load %arg5[%c0_15, %c0_16] : memref<1x256xf32, #tpu.memory_space<vmem>>, vector<1x256xf32>
      tpu.vector_store %arg5[%c0_15, %c0_16], %33 {strides = array<i32>} : memref<1x256xf32, #tpu.memory_space<vmem>>, vector<1x256xf32>,
    } else {
    }
    %27 = arith.extui %23 : i1 to i32
    %c0_i32_10 = arith.constant 0 : i32
    %28 = arith.cmpi ne, %27, %c0_i32_10 : i32
    scf.if %28 {
      %c256_i32 = arith.constant 256 : i32
      %32 = arith.muli %22, %c256_i32 : i32
      %33 = tpu.iota {dimensions = array<i32: 1>} : vector<1x256xi32>
      %34 = vector.broadcast %32 : i32 to vector<1x256xi32>
      %35 = arith.addi %34, %33 : vector<1x256xi32>
      %c0_13 = arith.constant 0 : index
      %c0_14 = arith.constant 0 : index
      %36 = vector.load %arg5[%c0_13, %c0_14] : memref<1x256xf32, #tpu.memory_space<vmem>>, vector<1x256xf32>
      %c200_i32 = arith.constant 200 : i32
      %37 = vector.broadcast %c200_i32 : i32 to vector<1x256xi32>
      %38 = arith.cmpi slt, %35, %37 : vector<1x256xi32>
      %cst_15 = arith.constant 0.000000e+00 : f32
      %39 = vector.broadcast %cst_15 : f32 to vector<1x256xf32>
      %40 = arith.select %38, %20, %39 : vector<1x256xi1>, vector<1x256xf32>
      %41 = arith.addf %36, %40 : vector<1x256xf32>
      %c0_16 = arith.constant 0 : index
      %c0_17 = arith.constant 0 : index
      %42 = vector.load %arg5[%c0_16, %c0_17] : memref<1x256xf32, #tpu.memory_space<vmem>>, vector<1x256xf32>
      tpu.vector_store %arg5[%c0_16, %c0_17], %41 {strides = array<i32>} : memref<1x256xf32, #tpu.memory_space<vmem>>, vector<1x256xf32>,
    } else {
    }
    %c0_i32_11 = arith.constant 0 : i32
    %29 = arith.cmpi eq, %arg1, %c0_i32_11 : i32
    %30 = arith.extui %29 : i1 to i32
    %c0_i32_12 = arith.constant 0 : i32
    %31 = arith.cmpi ne, %30, %c0_i32_12 : i32
    scf.if %31 {
      %c0_13 = arith.constant 0 : index
      %c0_14 = arith.constant 0 : index
      %32 = vector.load %arg5[%c0_13, %c0_14] : memref<1x256xf32, #tpu.memory_space<vmem>>, vector<1x256xf32>
      %cst_15 = arith.constant dense<0.000000e+00> : vector<1xf32>
      %33 = vector.multi_reduction <add>, %32, %cst_15 [1] : vector<1x256xf32> to vector<1xf32>
      %34 = vector.shape_cast %33 : vector<1xf32> to vector<1x1xf32>
      %cst_16 = arith.constant 0.000000e+00 : f32
      %35 = vector.broadcast %cst_16 : f32 to vector<1x1xf32>
      %36 = arith.subf %35, %34 : vector<1x1xf32>
      %c0_17 = arith.constant 0 : index
      %c0_18 = arith.constant 0 : index
      %c0_19 = arith.constant 0 : index
      %37 = vector.load %arg4[%c0_17, %c0_18, %c0_19] : memref<1x1x1xf32, #tpu.memory_space<vmem>>, vector<1x1x1xf32>
      %38 = vector.shape_cast %37 : vector<1x1x1xf32> to vector<1x1xf32>
      %39 = vector.shape_cast %36 : vector<1x1xf32> to vector<1x1x1xf32>
      tpu.vector_store %arg4[%c0_17, %c0_18, %c0_19], %39 {strides = array<i32>} : memref<1x1x1xf32, #tpu.memory_space<vmem>>, vector<1x1x1xf32>,
    } else {
    }
    return
  }
  func.func @transform_0(%arg0: i32, %arg1: i32) -> (i32, i32) {
    %c1_i32 = arith.constant 1 : i32
    %0 = arith.muli %arg0, %c1_i32 : i32
    %1 = arith.addi %0, %arg1 : i32
    %c0_i32 = arith.constant 0 : i32
    %2 = arith.minsi %1, %c0_i32 : i32
    %c0_i32_0 = arith.constant 0 : i32
    %c0_i32_1 = arith.constant 0 : i32
    return %c0_i32_0, %2 : i32, i32
  }
  func.func @transform_1(%arg0: i32, %arg1: i32) -> (i32, i32) {
    %c1_i32 = arith.constant 1 : i32
    %0 = arith.muli %arg0, %c1_i32 : i32
    %1 = arith.addi %0, %arg1 : i32
    %c0_i32 = arith.constant 0 : i32
    %2 = arith.minsi %1, %c0_i32 : i32
    %c0_i32_0 = arith.constant 0 : i32
    %c0_i32_1 = arith.constant 0 : i32
    return %c0_i32_0, %2 : i32, i32
  }
  func.func @transform_2(%arg0: i32, %arg1: i32) -> (i32, i32, i32) {
    %c0_i32 = arith.constant 0 : i32
    %c0_i32_0 = arith.constant 0 : i32
    %c0_i32_1 = arith.constant 0 : i32
    return %arg0, %c0_i32, %c0_i32_0 : i32, i32, i32
  }
}

</mosaic_0001>

<bundles_post_ra>
// kernel: tpu_custom_call.1
= control target key start
LH: loop header
LB: loop body
LE: loop exit
PB: predicated region body
PF: predicated region fallthrough
CT: control target
= control target key end

     0   :  { %7 = vsyncpa [#allocation4], 0  ;;  %s331_s0 = inlined_call_operand.hbm [shape: s32[1,200], index: 0, kind: input, shape index: {}]   ;;  %s332_s1 = inlined_call_operand.hbm [shape: f32[10,200], index: 1, kind: input, shape index: {}]   ;;  %s333_s2 = inlined_call_operand.hbm [shape: f32[1,1,1], index: 2, kind: output, shape index: {}]  }
   0x1   :  { %8 = vsyncpa [#allocation7], 0 }
   0x2   :  { %9 = vsyncpa [#allocation5], 0  ;;  %s20_s11 = sshll.u32 %s331_s0, 4  ;;  %s293_s12 = smov [#allocation3]   ;;  %s21_s11 = int_to_ptr.hbm [resolvable:$true] %s20_s11 }
   0x3   :  { %s22_s13 = sshll.u32 %s293_s12, 4  ;;  %s36_s16 = sshll.u32 %s332_s1, 4  ;;  %s23_s13 = int_to_ptr.vmem [resolvable:$true] %s22_s13  ;;  %s37_s16 = int_to_ptr.hbm [resolvable:$true] %s36_s16 }
   0x4   :  { %25 = dma.hbm_to_vmem [thread:$0]  %s21_s11, 32, %s23_s13, [#allocation4]  }
   0x5   :  { %s294_s17 = smov [#allocation6]   ;;  %s295_s19 = smov 256  }
   0x6   :  { %s38_s18 = sshll.u32 %s294_s17, 4  ;;  %s296_s20 = smov 16   ;;  %s39_s18 = int_to_ptr.vmem [resolvable:$true] %s38_s18 }
   0x7   :  { %44 = dma.hbm_to_vmem [thread:$0]  %s37_s16, 512, %s39_s18, [#allocation7], %s295_s19, %s295_s19, %s296_s20  }
   0x8   :  { %287 = dma.done.wait [#allocation4], 32  }
   0x9   :  { %288 = vsyncadd [#allocation4], 4294967264 }
   0xa   :  { %289 = dma.done.wait [#allocation7], 512  }
   0xb   :  { %290 = vsyncadd [#allocation7], 4294966784  ;;  %v65_v0 = vlaneseq  ;;  %v297_v2 = vmov 0.0   ;;  %v70_v5 = vld [vmem:[#allocation6] sm:$0xff]  ;;  %v71_v6 = vld [vmem:[#allocation6 + $0x8] sm:$0xff]  ;;  %vm88_vm1 = vcmask 1041408  }
   0xc   :  { %v77_v7 = vld [vmem:[#allocation3] sm:$0x3]  ;;  %v72_v8 = vld [vmem:[#allocation6 + $0x10] sm:$0x3]  ;;  %v73_v9 = vld [vmem:[#allocation6 + $0x18] sm:$0x3] }
   0xd   :  { %vm320_vm0 = vcmp.lt.s32.totalorder %v65_v0, 256  ;;  %v75_v3 = vshrl.u32 %v65_v0, 7  ;;  %v78_v10 = vperm.slane %v77_v7, 0  ;;  %v79_v11 = vperm.slane %v77_v7, 1  ;;  %s298_s0 = smov [#allocation8]   ;;  %s190_s23 = sshll.u32 %s333_s2, 4  ;;  %s191_s23 = int_to_ptr.hbm [resolvable:$true] %s190_s23 }
   0xe   :  { %69 = vst.msk [vmem:[#allocation2] sm:$0x3] %vm320_vm0, %v297_v2  ;;  %v143_v36 = vand.u32 127, %v65_v0  ;;  %vm156_vm7 = vcmask 1040384   ;;  %s188_s1 = sshll.u32 %s298_s0, 4  ;;  %vm181_vm8 = vcmask 0   ;;  %s189_s1 = int_to_ptr.vmem [resolvable:$true] %s188_s1 }
   0xf   :  { %v76_v4 = vadd.s32 8, %v75_v3  ;;  %vm80_vm2 = vcmp.eq.s32.totalorder %v75_v3, %v78_v10  ;;  %vm81_vm3 = vcmp.eq.s32.totalorder %v75_v3, %v79_v11 }
  0x10   :  { %v84_v12 = vsel %vm80_vm2, %v70_v5, 0.0  ;;  %v85_v13 = vsel %vm81_vm3, %v71_v6, 0.0  ;;  %v144_v39 = vadd.s32 128, %v143_v36 }
  0x11   :  { %vm82_vm4 = vcmp.eq.s32.totalorder %v76_v4, %v78_v10  ;;  %vm83_vm5 = vcmp.eq.s32.totalorder %v76_v4, %v79_v11 }
  0x12   :  { %v86_v14 = vsel %vm82_vm4, %v72_v8, 0.0  ;;  %v87_v15 = vsel %vm83_vm5, %v73_v9, 0.0  ;;  %vm150_vm6 = vcmp.lt.s32.totalorder %v144_v39, 200 }
  0x13   :  { %v89_v16 = vsel %vm88_vm1, %v86_v14, 0.0  ;;  %v97_v17 = vsel %vm88_vm1, %v87_v15, 0.0 }
  0x14   :  { %v90_v18 = vadd.f32 %v89_v16, %v84_v12  ;;  %v98_v19 = vadd.f32 %v97_v17, %v85_v13 }
  0x15   :  { %v148_v49 = vld [vmem:[#allocation2] sm:$0x3] }
  0x16   :  { %v91_v20 = vrot.slane %v90_v18, 4  ;;  %v99_v21 = vrot.slane %v98_v19, 4 }
  0x18   :  { %v92_v22 = vadd.f32 %v91_v20, %v90_v18  ;;  %v100_v23 = vadd.f32 %v99_v21, %v98_v19 }
  0x1a   :  { %v93_v24 = vrot.slane %v92_v22, 2  ;;  %v101_v25 = vrot.slane %v100_v23, 2 }
  0x1c   :  { %v94_v26 = vadd.f32 %v93_v24, %v92_v22  ;;  %v102_v27 = vadd.f32 %v101_v25, %v100_v23 }
  0x1e   :  { %v95_v28 = vrot.slane %v94_v26, 1  ;;  %v103_v29 = vrot.slane %v102_v27, 1 }
  0x20   :  { %v96_v30 = vadd.f32 %v95_v28, %v94_v26  ;;  %v104_v31 = vadd.f32 %v103_v29, %v102_v27 }
  0x22   :  { %v106_v32 = vsub.f32 1.0, %v104_v31  ;;  %v109_v33 = vadd.f32 1e-08, %v96_v30  ;;  %v110_v34 = vadd.f32 1e-08, %v104_v31  ;;  %v105_v35 = vsub.f32 1.0, %v96_v30 }
  0x24   :  { %211 = vlog2.f32 %v109_v33  ;;  %v108_v37 = vadd.f32 1e-08, %v106_v32  ;;  %v107_v38 = vadd.f32 1e-08, %v105_v35 }
  0x25   :  { %213 = vlog2.f32 %v110_v34 }
  0x26   :  { %v116_v41 = vmul.f32 %v108_v37, %v108_v37  ;;  %v115_v44 = vmul.f32 %v107_v38, %v107_v38 }
  0x2a   :  { %v212_v40 = vpop.eup %211 }
  0x2b   :  { %v214_v42 = vpop.eup %213  ;;  %v112_v43 = vmul.f32 0.6931472, %v212_v40 }
  0x2c   :  { %v114_v45 = vmul.f32 0.6931472, %v214_v42 }
  0x2d   :  { %v117_v47 = vmul.f32 %v115_v44, %v112_v43 }
  0x2e   :  { %v118_v46 = vmul.f32 %v116_v41, %v114_v45 }
  0x30   :  { %v152_v48 = vsel %vm150_vm6, %v118_v46, 0.0 }
  0x31   :  { %v155_v50 = vrot.slane %v152_v48, 7 }
  0x33   :  { %v157_v51 = vsel %vm156_vm7, %v117_v47, %v155_v50 }
  0x34   :  { %v159_v52 = vadd.f32 %v157_v51, %v148_v49 }
  0x36   :  { %164 = vst.msk [vmem:[#allocation2] sm:$0x3] %vm320_vm0, %v159_v52 }
  0x3d   :  { %v168_v53 = vld [vmem:[#allocation2] sm:$0x3] }
  0x3e   :  { %v170_v54 = vperm.slane %v168_v53, 0  ;;  %v171_v55 = vperm.slane %v168_v53, 1 }
  0x40   :  { %v175_v56 = vsel %vm156_vm7, %v170_v54, 0.0  ;;  %v176_v57 = vsel %vm156_vm7, %v171_v55, 0.0 }
  0x41   :  { %v177_v58 = vadd.f32 %v176_v57, %v175_v56 }
  0x43   :  { %178 = vadd.xlane.f32.xlu0 %v177_v58 }
  0xb6   :  { %v179_v59 = vpop.xlane.xlu0 %178 }
  0xb7   :  { %v180_v60 = vsub.f32 0.0, %v179_v59 }
  0xb9   :  { %182 = vst.msk [vmem:[#allocation8] sm:$0x1] %vm181_vm8, %v180_v60 }
  0xba   :  { %193 = dma.vmem_to_hbm [thread:$0]  %s189_s1, 16, %s191_s23, [#allocation5]  }
  0xbb   :  { %291 = dma.done.wait [#allocation5], 16  }
  0xbc   :  { %292 = vsyncadd [#allocation5], 4294967280 }
  0xbd   :  { %198 = vsyncpa [#allocation4], 1 }
  0xbe   :  { %199 = vsyncpa [#allocation7], 1 }
  0xbf   :  { %200 = vsyncpa [#allocation5], 1 }

</bundles_post_ra>
